<compile_context>
chip_gen: v5e
topology: v5e:2x2
jax: 0.10.0
libtpu: 0.0.40
codegen_flags: <defaults>
</compile_context>

<pallas_src>
import functools

import jax
import jax.numpy as jnp
from jax.experimental import pallas as pl
from jax.experimental.pallas import tpu as pltpu


def _cdiv(a, b):
    return -(-a // b)


def _round_up(x, m):
    return ((x + m - 1) // m) * m


def _guess_num_tensorcores():
    """Best-effort TensorCores-per-chip (2 on v7x, 1 on v5e/v6e)."""
    try:
        info = pltpu.get_tpu_info()
        for name in ("num_cores", "num_tensorcores", "tensorcores_per_chip",
                     "cores_per_chip"):
            v = getattr(info, name, None)
            if v:
                return int(v)
    except Exception:
        pass
    try:
        d = jax.devices()[0]
        for name in ("num_cores", "core_count"):
            v = getattr(d, name, None)
            if v:
                return int(v)
    except Exception:
        pass
    # Unknown: a size-2 "parallel" axis is harmless (sequential) on 1-TC chips
    # and enables the megacore split on v7x.
    return 2


def _vmem_limit_bytes():
    cap = None
    try:
        cap = int(getattr(pltpu.get_tpu_info(), "vmem_capacity_bytes", 0)) or None
    except Exception:
        cap = None
    if cap is None:
        cap = 64 * 1024 * 1024          # safe floor (v7x physical VMEM)
    # Leave headroom for Mosaic internal scratch; never request more than 100 MiB.
    return min((cap * 3) // 4, 100 * 1024 * 1024)


def _field_loss_kernel(*refs, cosine_weight, use_cosine, have_log_sigma,
                       tb, npc, true_b):
    if have_log_sigma:
        pred_ref, target_ref, w_ref, ls_ref, out_ref, acc_ref = refs
    else:
        pred_ref, target_ref, w_ref, out_ref, acc_ref = refs
        ls_ref = None

    c = pl.program_id(0)       # core-chunk index (parallel axis)
    i = pl.program_id(1)       # row-block index within the chunk (arbitrary axis)

    @pl.when(i == 0)
    def _init():
        acc_ref[...] = jnp.zeros_like(acc_ref)

    pred = pred_ref[...].astype(jnp.float32)       # [TB, D]
    target = target_ref[...].astype(jnp.float32)   # [TB, D]

    diff = pred - target
    mag = jnp.sum(diff * diff, axis=-1, keepdims=True)            # [TB, 1]

    if use_cosine:
        dot = jnp.sum(pred * target, axis=-1, keepdims=True)
        pn2 = jnp.sum(pred * pred, axis=-1, keepdims=True)
        tn2 = jnp.sum(target * target, axis=-1, keepdims=True)
        # F.cosine_similarity(eps=1e-8) clamps each norm separately:
        # dot / (max(|p|,eps)*max(|t|,eps)) == dot*rsqrt(max(pn2,eps^2))*rsqrt(max(tn2,eps^2))
        inv_p = jax.lax.rsqrt(jnp.maximum(pn2, 1e-16))
        inv_t = jax.lax.rsqrt(jnp.maximum(tn2, 1e-16))
        cos_sim = dot * inv_p * inv_t
        # forward value of mag + w*(1-cos)*mag.detach()
        loss = mag * (1.0 + cosine_weight * (1.0 - cos_sim))
    else:
        loss = mag

    # Global row-block index (unclamped -- the index_map clamps the DMA, the mask
    # here zeroes any duplicated / out-of-range rows).
    gb = c * npc + i
    row_start = pl.multiple_of(gb * tb, 8)

    # Resident (permission*alignment) weight, sliced per block.
    w = w_ref[pl.ds(row_start, tb), :].astype(jnp.float32)         # [TB, 1]
    row = loss * w                                                  # [TB, 1]

    if have_log_sigma:
        ls = ls_ref[...].astype(jnp.float32)                        # [TB, D]
        ent_row = jnp.sum(jnp.exp(-jnp.abs(ls)), axis=-1, keepdims=True)
        row = row * ent_row                                         # [TB, 1]

    # Ragged-tail / duplicated-block mask (B is a trace-time constant).
    rid = jax.lax.broadcasted_iota(jnp.int32, (tb, 1), 0) + gb * tb
    row = jnp.where(rid < true_b, row, 0.0)

    # Plain VPU add into the VMEM vector accumulator (no per-step scalar sync).
    acc_ref[...] += row

    @pl.when(i == npc - 1)
    def _finalize():
        partial = jnp.sum(acc_ref[...])                             # single reduce
        out_ref[...] = jnp.broadcast_to(partial, (1, 8, 128)).astype(jnp.float32)


def nikola_field_loss(pred, target, permission, alignment, log_sigma=None, *,
                      cosine_weight=0.5, use_cosine=True, reduction='mean',
                      tb=None, num_cores=None):
    """Scalar NikolaFieldLoss (reduction='mean' or 'sum') as one Pallas kernel."""
    if reduction not in ('mean', 'sum'):
        # TODO(synk): reduction='none' (per-element output) not implemented.
        raise NotImplementedError("only reduction in {'mean','sum'} supported")

    B, D = pred.shape
    have_ls = log_sigma is not None

    # Pre-multiply the two tiny modulation signals into one resident weight.
    weight = (jnp.reshape(permission, (B, 1)).astype(jnp.float32) *
              jnp.reshape(alignment, (B, 1)).astype(jnp.float32))

    # ---- generation-aware VMEM budget
    vmem_limit = _vmem_limit_bytes()
    weight_bytes = 2 * _round_up(B, 8) * 4 + 2 * 8 * 128 * 4
    vmem_budget = max(2 * 1024 * 1024, vmem_limit - 4 * 1024 * 1024 - weight_bytes)

    # ---- row tile: target ~2 MiB per (TB, D) stream block, bounded by VMEM and B
    n_streams = 3 if have_ls else 2
    itemsizes = [jnp.dtype(pred.dtype).itemsize, jnp.dtype(target.dtype).itemsize]
    if have_ls:
        itemsizes.append(jnp.dtype(log_sigma.dtype).itemsize)
    itemsize = max(itemsizes)
    target_block_bytes = 2 * 1024 * 1024
    tb_req = int(tb) if tb is not None else max(8, target_block_bytes // (D * itemsize))
    bytes_per_row_dbuf = 2 * n_streams * D * itemsize + 16   # double-buffered streams + acc
    max_tb_vmem = max(8, vmem_budget // bytes_per_row_dbuf)
    tb_eff = min(tb_req, max_tb_vmem, _round_up(B, 8))
    tb_eff = max(8, (tb_eff // 8) * 8)

    # ---- grid: (cores, row-blocks-per-core); no padding of the [B, D] streams.
    nblk = _cdiv(B, tb_eff)
    ncores = _guess_num_tensorcores() if num_cores is None else int(num_cores)
    ncores_eff = max(1, min(int(ncores), nblk))
    npc = _cdiv(nblk, ncores_eff)

    # Pad only the tiny (B, 1) weight so the resident in-kernel slice is in-bounds
    # even for the (at most ncores-1) clamped duplicate blocks.
    total_rows = ncores_eff * npc * tb_eff
    if total_rows != B:
        weight = jnp.pad(weight, ((0, total_rows - B), (0, 0)))

    # ---- global mean denominator (matches the reference broadcast shape)
    if reduction == 'mean':
        denom = float(B * D) if have_ls else float(B)
    else:
        denom = 1.0

    bd_spec = pl.BlockSpec(
        (tb_eff, D),
        lambda c, i: (jnp.minimum(c * npc + i, nblk - 1), 0))       # clamp tail dup
    w_spec = pl.BlockSpec((total_rows, 1), lambda c, i: (0, 0))     # resident, one DMA

    in_specs = [bd_spec, bd_spec, w_spec]
    operands = [pred, target, weight]
    if have_ls:
        in_specs.append(bd_spec)
        operands.append(log_sigma)

    kernel = functools.partial(_field_loss_kernel,
                               cosine_weight=float(cosine_weight),
                               use_cosine=bool(use_cosine),
                               have_log_sigma=have_ls,
                               tb=tb_eff, npc=npc, true_b=B)

    out = pl.pallas_call(
        kernel,
        out_shape=jax.ShapeDtypeStruct((ncores_eff, 8, 128), jnp.float32),
        grid_spec=pltpu.PrefetchScalarGridSpec(
            num_scalar_prefetch=0,
            grid=(ncores_eff, npc),
            in_specs=in_specs,
            out_specs=pl.BlockSpec((1, 8, 128), lambda c, i: (c, 0, 0)),
            scratch_shapes=[pltpu.VMEM((tb_eff, 1), jnp.float32)],
        ),
        compiler_params=pltpu.CompilerParams(
            dimension_semantics=("parallel", "arbitrary"),
            vmem_limit_bytes=int(vmem_limit),
        ),
    )(*operands)

    partials = out[:, 0, 0]                  # one partial sum per core-chunk
    return jnp.sum(partials) * jnp.float32(1.0 / denom)


def _reference(pred, target, permission, alignment, log_sigma,
               cosine_weight=0.5, use_cosine=True, reduction='mean'):
    diff = pred - target
    mag = jnp.sum(diff * diff, axis=-1, keepdims=True)
    if use_cosine:
        dot = jnp.sum(pred * target, axis=-1, keepdims=True)
        pn = jnp.linalg.norm(pred, axis=-1, keepdims=True)
        tn = jnp.linalg.norm(target, axis=-1, keepdims=True)
        cos_sim = dot / (jnp.maximum(pn, 1e-8) * jnp.maximum(tn, 1e-8))
        loss = mag + cosine_weight * (1.0 - cos_sim) * mag
    else:
        loss = mag
    entropy_mask = jnp.exp(-jnp.abs(log_sigma)) if log_sigma is not None else 1.0
    field = loss * jnp.reshape(permission, (-1, 1)) * \
        jnp.reshape(alignment, (-1, 1)) * entropy_mask
    return jnp.mean(field) if reduction == 'mean' else jnp.sum(field)


if __name__ == "__main__":
    key = jax.random.PRNGKey(0)
    k1, k2, k3, k4, k5, k6, k7, k8, k9, k10 = jax.random.split(key, 10)

    B, D = 48, 128
    pred = jax.random.normal(k1, (B, D), jnp.float32)
    target = jax.random.normal(k2, (B, D), jnp.float32)
    permission = jax.nn.sigmoid(jax.random.normal(k3, (B, 1), jnp.float32))
    alignment = jax.nn.sigmoid(jax.random.normal(k4, (B, 1), jnp.float32))
    log_sigma = 0.5 * jax.random.normal(k5, (B, D), jnp.float32)

    # Case 1: full path, multi-block grid + core-split + clamped duplicate block
    # (tb=16 -> nblk=3, ncores_eff<=2, npc=2, grid=(2,2) on any generation).
    out1 = jax.block_until_ready(
        nikola_field_loss(pred, target, permission, alignment, log_sigma, tb=16))
    ref1 = _reference(pred, target, permission, alignment, log_sigma)
    assert jnp.allclose(out1, ref1, rtol=1e-5, atol=1e-5), (out1, ref1)

    # Case 2: log_sigma=None fast path, auto tile size (single big block here).
    out2 = jax.block_until_ready(
        nikola_field_loss(pred, target, permission, alignment, None))
    ref2 = _reference(pred, target, permission, alignment, None)
    assert jnp.allclose(out2, ref2, rtol=1e-5, atol=1e-5), (out2, ref2)

    # Case 3: ragged batch (B=50, no padding of the [B,D] streams) with 'sum'.
    Br = 50
    pred_r = jax.random.normal(k6, (Br, D), jnp.float32)
    target_r = jax.random.normal(k7, (Br, D), jnp.float32)
    perm_r = jax.nn.sigmoid(jax.random.normal(k8, (Br, 1), jnp.float32))
    align_r = jax.nn.sigmoid(jax.random.normal(k9, (Br, 1), jnp.float32))
    ls_r = 0.5 * jax.random.normal(k10, (Br, D), jnp.float32)
    out3 = jax.block_until_ready(
        nikola_field_loss(pred_r, target_r, perm_r, align_r, ls_r,
                          reduction='sum', tb=16))
    ref3 = _reference(pred_r, target_r, perm_r, align_r, ls_r, reduction='sum')
    assert jnp.allclose(out3, ref3, rtol=1e-5, atol=1e-4), (out3, ref3)

    # Case 4: use_cosine=False branch.
    out4 = jax.block_until_ready(
        nikola_field_loss(pred, target, permission, alignment, log_sigma,
                          use_cosine=False, tb=16))
    ref4 = _reference(pred, target, permission, alignment, log_sigma,
                      use_cosine=False)
    assert jnp.allclose(out4, ref4, rtol=1e-5, atol=1e-5), (out4, ref4)

    print("KERNEL_OK")
</pallas_src>

<mosaic_0001>
module attributes {stable_mosaic.version = 11 : i64} {
  func.func @_field_loss_kernel(%arg0: i32, %arg1: i32, %arg2: memref<16x128xf32, #tpu.memory_space<vmem>>, %arg3: memref<16x128xf32, #tpu.memory_space<vmem>>, %arg4: memref<64x1xf32, #tpu.memory_space<vmem>>, %arg5: memref<16x128xf32, #tpu.memory_space<vmem>>, %arg6: memref<1x8x128xf32, #tpu.memory_space<vmem>>, %arg7: memref<16x1xf32, #tpu.memory_space<vmem>>) attributes {dimension_semantics = [#tpu.dimension_semantics<parallel>, #tpu.dimension_semantics<arbitrary>], iteration_bounds = array<i64: 2, 2>, scalar_prefetch = 0 : i64, scratch_operands = 1 : i64, tpu.core_type = #tpu.core_type<tc>, window_params = [{transform_indices = @transform_0, window_bounds = array<i64: 16, 128>}, {transform_indices = @transform_1, window_bounds = array<i64: 16, 128>}, {pipeline_mode = #tpu.pipeline_mode<synchronous>, transform_indices = @transform_2, window_bounds = array<i64: 64, 1>}, {transform_indices = @transform_3, window_bounds = array<i64: 16, 128>}, {transform_indices = @transform_4, window_bounds = array<i64: 1, 8, 128>}]} {
    %c0_i32 = arith.constant 0 : i32
    %0 = arith.cmpi eq, %arg1, %c0_i32 : i32
    %1 = arith.extui %0 : i1 to i32
    %c0_i32_0 = arith.constant 0 : i32
    %2 = arith.cmpi ne, %1, %c0_i32_0 : i32
    scf.if %2 {
      %cst_24 = arith.constant 0.000000e+00 : f32
      %62 = vector.broadcast %cst_24 : f32 to vector<16x1xf32>
      %c0_25 = arith.constant 0 : index
      %c0_26 = arith.constant 0 : index
      %63 = vector.load %arg7[%c0_25, %c0_26] : memref<16x1xf32, #tpu.memory_space<vmem>>, vector<16x1xf32>
      tpu.vector_store %arg7[%c0_25, %c0_26], %62 {strides = array<i32>} : memref<16x1xf32, #tpu.memory_space<vmem>>, vector<16x1xf32>,
    } else {
    }
    %c0 = arith.constant 0 : index
    %c0_1 = arith.constant 0 : index
    %3 = vector.load %arg2[%c0, %c0_1] : memref<16x128xf32, #tpu.memory_space<vmem>>, vector<16x128xf32>
    %c0_2 = arith.constant 0 : index
    %c0_3 = arith.constant 0 : index
    %4 = vector.load %arg3[%c0_2, %c0_3] : memref<16x128xf32, #tpu.memory_space<vmem>>, vector<16x128xf32>
    %5 = arith.subf %3, %4 : vector<16x128xf32>
    %6 = arith.mulf %5, %5 : vector<16x128xf32>
    %cst = arith.constant dense<0.000000e+00> : vector<16xf32>
    %7 = vector.multi_reduction <add>, %6, %cst [1] : vector<16x128xf32> to vector<16xf32>
    %8 = vector.shape_cast %7 : vector<16xf32> to vector<16x1xf32>
    %9 = arith.mulf %3, %4 : vector<16x128xf32>
    %cst_4 = arith.constant dense<0.000000e+00> : vector<16xf32>
    %10 = vector.multi_reduction <add>, %9, %cst_4 [1] : vector<16x128xf32> to vector<16xf32>
    %11 = vector.shape_cast %10 : vector<16xf32> to vector<16x1xf32>
    %12 = arith.mulf %3, %3 : vector<16x128xf32>
    %cst_5 = arith.constant dense<0.000000e+00> : vector<16xf32>
    %13 = vector.multi_reduction <add>, %12, %cst_5 [1] : vector<16x128xf32> to vector<16xf32>
    %14 = vector.shape_cast %13 : vector<16xf32> to vector<16x1xf32>
    %15 = arith.mulf %4, %4 : vector<16x128xf32>
    %cst_6 = arith.constant dense<0.000000e+00> : vector<16xf32>
    %16 = vector.multi_reduction <add>, %15, %cst_6 [1] : vector<16x128xf32> to vector<16xf32>
    %17 = vector.shape_cast %16 : vector<16xf32> to vector<16x1xf32>
    %cst_7 = arith.constant 1.000000e-16 : f32
    %18 = vector.broadcast %cst_7 : f32 to vector<16x1xf32>
    %19 = arith.maximumf %14, %18 : vector<16x1xf32>
    %20 = math.rsqrt %19 : vector<16x1xf32>
    %cst_8 = arith.constant 1.000000e-16 : f32
    %21 = vector.broadcast %cst_8 : f32 to vector<16x1xf32>
    %22 = arith.maximumf %17, %21 : vector<16x1xf32>
    %23 = math.rsqrt %22 : vector<16x1xf32>
    %24 = arith.mulf %11, %20 : vector<16x1xf32>
    %25 = arith.mulf %24, %23 : vector<16x1xf32>
    %cst_9 = arith.constant 1.000000e+00 : f32
    %26 = vector.broadcast %cst_9 : f32 to vector<16x1xf32>
    %27 = arith.subf %26, %25 : vector<16x1xf32>
    %cst_10 = arith.constant 5.000000e-01 : f32
    %28 = vector.broadcast %cst_10 : f32 to vector<16x1xf32>
    %29 = arith.mulf %28, %27 : vector<16x1xf32>
    %cst_11 = arith.constant 1.000000e+00 : f32
    %30 = vector.broadcast %cst_11 : f32 to vector<16x1xf32>
    %31 = arith.addf %30, %29 : vector<16x1xf32>
    %32 = arith.mulf %8, %31 : vector<16x1xf32>
    %c2_i32 = arith.constant 2 : i32
    %33 = arith.muli %arg0, %c2_i32 : i32
    %34 = arith.addi %33, %arg1 : i32
    %c16_i32 = arith.constant 16 : i32
    %35 = arith.muli %34, %c16_i32 : i32
    %36 = tpu.assume_multiple %35, 8 : i32
    %37 = arith.index_cast %36 : i32 to index
    %c0_12 = arith.constant 0 : index
    %38 = vector.load %arg4[%37, %c0_12] : memref<64x1xf32, #tpu.memory_space<vmem>>, vector<16x1xf32>
    %39 = arith.mulf %32, %38 : vector<16x1xf32>
    %c0_13 = arith.constant 0 : index
    %c0_14 = arith.constant 0 : index
    %40 = vector.load %arg5[%c0_13, %c0_14] : memref<16x128xf32, #tpu.memory_space<vmem>>, vector<16x128xf32>
    %41 = math.absf %40 : vector<16x128xf32>
    %cst_15 = arith.constant 0.000000e+00 : f32
    %42 = vector.broadcast %cst_15 : f32 to vector<16x128xf32>
    %43 = arith.subf %42, %41 : vector<16x128xf32>
    %44 = math.exp %43 : vector<16x128xf32>
    %cst_16 = arith.constant dense<0.000000e+00> : vector<16xf32>
    %45 = vector.multi_reduction <add>, %44, %cst_16 [1] : vector<16x128xf32> to vector<16xf32>
    %46 = vector.shape_cast %45 : vector<16xf32> to vector<16x1xf32>
    %47 = arith.mulf %39, %46 : vector<16x1xf32>
    %48 = tpu.iota {dimensions = array<i32: 0>} : vector<16x1xi32>
    %c16_i32_17 = arith.constant 16 : i32
    %49 = arith.muli %34, %c16_i32_17 : i32
    %50 = vector.broadcast %49 : i32 to vector<16x1xi32>
    %51 = arith.addi %48, %50 : vector<16x1xi32>
    %c48_i32 = arith.constant 48 : i32
    %52 = vector.broadcast %c48_i32 : i32 to vector<16x1xi32>
    %53 = arith.cmpi slt, %51, %52 : vector<16x1xi32>
    %cst_18 = arith.constant 0.000000e+00 : f32
    %54 = vector.broadcast %cst_18 : f32 to vector<16x1xf32>
    %55 = arith.select %53, %47, %54 : vector<16x1xi1>, vector<16x1xf32>
    %c0_19 = arith.constant 0 : index
    %c0_20 = arith.constant 0 : index
    %56 = vector.load %arg7[%c0_19, %c0_20] : memref<16x1xf32, #tpu.memory_space<vmem>>, vector<16x1xf32>
    %57 = arith.addf %56, %55 : vector<16x1xf32>
    %c0_21 = arith.constant 0 : index
    %c0_22 = arith.constant 0 : index
    %58 = vector.load %arg7[%c0_21, %c0_22] : memref<16x1xf32, #tpu.memory_space<vmem>>, vector<16x1xf32>
    tpu.vector_store %arg7[%c0_21, %c0_22], %57 {strides = array<i32>} : memref<16x1xf32, #tpu.memory_space<vmem>>, vector<16x1xf32>,
    %c1_i32 = arith.constant 1 : i32
    %59 = arith.cmpi eq, %arg1, %c1_i32 : i32
    %60 = arith.extui %59 : i1 to i32
    %c0_i32_23 = arith.constant 0 : i32
    %61 = arith.cmpi ne, %60, %c0_i32_23 : i32
    scf.if %61 {
      %c0_24 = arith.constant 0 : index
      %c0_25 = arith.constant 0 : index
      %62 = vector.load %arg7[%c0_24, %c0_25] : memref<16x1xf32, #tpu.memory_space<vmem>>, vector<16x1xf32>
      %63 = vector.shape_cast %62 : vector<16x1xf32> to vector<1x16x1xf32>
      %cst_26 = arith.constant dense<0.000000e+00> : vector<1xf32>
      %64 = vector.multi_reduction <add>, %63, %cst_26 [1, 2] : vector<1x16x1xf32> to vector<1xf32>
      %65 = vector.shape_cast %64 : vector<1xf32> to vector<1x1x1xf32>
      %66 = vector.extract %65[0, 0, 0] : f32 from vector<1x1x1xf32>
      %67 = vector.broadcast %66 : f32 to vector<1x8x128xf32>
      %c0_27 = arith.constant 0 : index
      %c0_28 = arith.constant 0 : index
      %c0_29 = arith.constant 0 : index
      %68 = vector.load %arg6[%c0_27, %c0_28, %c0_29] : memref<1x8x128xf32, #tpu.memory_space<vmem>>, vector<1x8x128xf32>
      tpu.vector_store %arg6[%c0_27, %c0_28, %c0_29], %67 {strides = array<i32>} : memref<1x8x128xf32, #tpu.memory_space<vmem>>, vector<1x8x128xf32>,
    } else {
    }
    return
  }
  func.func @transform_0(%arg0: i32, %arg1: i32) -> (i32, i32) {
    %c2_i32 = arith.constant 2 : i32
    %0 = arith.muli %arg0, %c2_i32 : i32
    %1 = arith.addi %0, %arg1 : i32
    %c2_i32_0 = arith.constant 2 : i32
    %2 = arith.minsi %1, %c2_i32_0 : i32
    %c0_i32 = arith.constant 0 : i32
    %c0_i32_1 = arith.constant 0 : i32
    return %2, %c0_i32 : i32, i32
  }
  func.func @transform_1(%arg0: i32, %arg1: i32) -> (i32, i32) {
    %c2_i32 = arith.constant 2 : i32
    %0 = arith.muli %arg0, %c2_i32 : i32
    %1 = arith.addi %0, %arg1 : i32
    %c2_i32_0 = arith.constant 2 : i32
    %2 = arith.minsi %1, %c2_i32_0 : i32
    %c0_i32 = arith.constant 0 : i32
    %c0_i32_1 = arith.constant 0 : i32
    return %2, %c0_i32 : i32, i32
  }
  func.func @transform_2(%arg0: i32, %arg1: i32) -> (i32, i32) {
    %c0_i32 = arith.constant 0 : i32
    %c0_i32_0 = arith.constant 0 : i32
    %c0_i32_1 = arith.constant 0 : i32
    return %c0_i32, %c0_i32_0 : i32, i32
  }
  func.func @transform_3(%arg0: i32, %arg1: i32) -> (i32, i32) {
    %c2_i32 = arith.constant 2 : i32
    %0 = arith.muli %arg0, %c2_i32 : i32
    %1 = arith.addi %0, %arg1 : i32
    %c2_i32_0 = arith.constant 2 : i32
    %2 = arith.minsi %1, %c2_i32_0 : i32
    %c0_i32 = arith.constant 0 : i32
    %c0_i32_1 = arith.constant 0 : i32
    return %2, %c0_i32 : i32, i32
  }
  func.func @transform_4(%arg0: i32, %arg1: i32) -> (i32, i32, i32) {
    %c0_i32 = arith.constant 0 : i32
    %c0_i32_0 = arith.constant 0 : i32
    %c0_i32_1 = arith.constant 0 : i32
    return %arg0, %c0_i32, %c0_i32_0 : i32, i32, i32
  }
}

</mosaic_0001>

<bundles_post_ra>
// kernel: tpu_custom_call.1
= control target key start
LH: loop header
LB: loop body
LE: loop exit
PB: predicated region body
PF: predicated region fallthrough
CT: control target
= control target key end

     0   :  { %s1258_s0 = inlined_call_operand.vmem [shape: f32[48,128], index: 0, kind: input, shape index: {}]   ;;  %s1259_s1 = inlined_call_operand.hbm [shape: f32[48,128], index: 1, kind: input, shape index: {}]   ;;  %s1260_s2 = inlined_call_operand.vmem [shape: f32[64,1], index: 2, kind: input, shape index: {}]   ;;  %s1261_s3 = inlined_call_operand.hbm [shape: f32[48,128], index: 3, kind: input, shape index: {}]   ;;  %s1262_s4 = inlined_call_operand.hbm [shape: f32[2,8,128], index: 4, kind: output, shape index: {}]  }
   0x1   :  { %1270 = sst [smem:[#allocation21_spill]] %s1259_s1 }
   0x2   :  { %9 = vsyncpa [#allocation4], 0 }
   0x3   :  { %11 = vsyncpa [#allocation4 + $0x1], 0 }
   0x4   :  { %12 = vsyncpa [#allocation7], 0 }
   0x5   :  { %14 = vsyncpa [#allocation7 + $0x1], 0 }
   0x6   :  { %15 = vsyncpa [#allocation5], 0 }
   0x7   :  { %17 = vsyncpa [#allocation5 + $0x1], 0  ;;  %s1021_s15 = smov 0   ;;  %s1023_s16 = smov 0  }
   0x8   :  { %s1025_s17 = smov 0   ;;  %s1027_s18 = smov 0  }
   0x9   :  { %s1029_s19 = smov 0   ;;  %s1031_s20 = smov 0  }
   0xa   :  { %s1033_s21 = smov 0   ;;  %s1035_s22 = smov 0  }
   0xb   :  { %s1037_s23 = smov 0   ;;  %s1039_s24 = smov 0  }
   0xc   :  { %s1041_s25 = smov 0  }
   0xd LB: > { %1271 = sst [smem:[#allocation12_spill]] %s959_s17  ;;  %s646_s26 = sadd.s32 4294967295, %s991_s25   ;;  %s991_s25 = sphi %s1041_s25, %s23_s25   ;;  %s987_s24 = sphi %s1039_s24, %s1294_s24   ;;  %s983_s23 = sphi %s1037_s23, %s1293_s23   ;;  %s979_s22 = sphi %s1035_s22, %s1292_s22   ;;  %s975_s21 = sphi %s1033_s21, %s1291_s21   ;;  %s971_s20 = sphi %s1031_s20, %s1290_s20   ;;  %s967_s19 = sphi %s1029_s19, %s1298_s19   ;;  %s963_s18 = sphi %s1027_s18, %s1297_s18   ;;  %s959_s17 = sphi %s1025_s17, %s1288_s17   ;;  %s955_s16 = sphi %s1023_s16, %s1296_s16   ;;  %s951_s15 = sphi %s1021_s15, %s1295_s15  }
   0xe   : > { %1272 = sst [smem:[#allocation13_spill]] %s971_s20  ;;  %s647_s27 = sadd.s32 4294967294, %s991_s25  }
   0xf   : > { %1273 = sst [smem:[#allocation14_spill]] %s983_s23  ;;  %s32_s28 = sadd.s32 1, %s983_s23 }
  0x10   : > { %1274 = sst [smem:[#allocation15_spill]] %s987_s24  ;;  %s35_s29 = sadd.s32 1, %s987_s24 }
  0x11   : > { %p33_p0 = scmp.ge.s32.totalorder %s32_s28, 2  ;;  %s650_s30 = sshll.u32 %s987_s24, 1 }
  0x12   : > { %s74_s5 = sadd.s32 %s983_s23, %s650_s30  ;;  %s84_s6 = sadd.s32 1, %s971_s20 }
  0x13   : > { %s1300_s28 = smov (%p33_p0, %s32_s28), 0  ;;  %s1302_s29 = smov (!%p33_p0, %s35_s29), %s987_s24 }
  0x14   : > { %1275 = sst [smem:[#allocation16_spill]] %s1300_s28  ;;  %p75_p1 = scmp.lt.s32.totalorder %s74_s5, 2 }
  0x15   : > { %p91_p2 = scmp.ne.s32.totalorder %s971_s20, %s967_s19  ;;  %p37_p3 = scmp.ge.s32.totalorder %s1302_s29, 2 }
  0x16   : > { %p92_p4 = scmp.eq.s32.totalorder %s991_s25, 0  ;;  %s1304_s5 = smov (!%p75_p1, %s74_s5), 2 }
  0x17   : > { %s1306_s29 = smov (%p37_p3, %s1302_s29), 0  ;;  %p97_p6 = scmp.ne.s32.totalorder %s967_s19, %s963_s18 }
  0x18   : > { %1276 = sst [smem:[#allocation17_spill]] %s1306_s29  ;;  %p1093_p5 = por %p92_p4, %p91_p2 }
  0x19   : > { %s651_s8 = sshll.u32 %s1306_s29, 1  ;;  %p98_p7 = scmp.eq.s32.totalorder %s646_s26, 0 }
  0x1a   : > { %s78_s9 = sadd.s32 %s651_s8, %s1300_s28  ;;  %s162_s10 = ssub.s32 %s987_s24, %s1306_s29 }
  0x1b   : > { %p79_p8 = scmp.lt.s32.totalorder %s78_s9, 2  ;;  %p1105_p9 = por %p98_p7, %p97_p6 }
  0x1c   : > { %p163_p10 = scmp.eq.s32.totalorder %s162_s10, 0  ;;  %s165_s12 = sadd.s32 1, %s959_s17 }
  0x1d   : > { %s1308_s9 = smov (!%p79_p8, %s78_s9), 2  ;;  %p175_p11 = scmp.ne.s32.totalorder %s959_s17, %s955_s16 }
  0x1e   : > { %s1111_s13 = scalar_select %p163_p10, %s959_s17, %s165_s12  }
  0x1f   : > { %s81_s14 = ssub.s32 %s1304_s5, %s1308_s9  ;;  %p176_p13 = scmp.eq.s32.totalorder %s646_s26, 3 }
  0x20   : > { %1279 = sst [smem:[#allocation18_spill]] %s1111_s13  ;;  %p82_p12 = scmp.eq.s32.totalorder %s81_s14, 0 }
  0x21   : > { %p181_p0 = scmp.ne.s32.totalorder %s955_s16, %s951_s15  ;;  %p182_p1 = scmp.eq.s32.totalorder %s647_s27, 3 }
  0x22   : > { %s1123_s18 = scalar_select %p82_p12, %s971_s20, %s84_s6  }
  0x23   : > { %p1125_p2 = por %p176_p13, %p175_p11  ;;  %p1129_p3 = por %p182_p1, %p181_p0 }
  0x24   : > { %1280 = sst [smem:[#allocation19_spill]] %s1123_s18  ;;  %p700_p4 = scmp.lt.s32.totalorder %s991_s25, 4 }
  0x25   : > { %s1282_s8 = scalar_select %p1129_p3, 1, 0 }
  0x26   : > { %s1135_s9 = sand.u32 1, %s971_s20   ;;  %s679_s26 = sshll.u32 %s1304_s5, 4 }
  0x27   : > { %1283 = sst [smem:[#allocation20_spill]] %s1282_s8  ;;  %s656_s10 = sshll.u32 %s1135_s9, 4 }
  0x28   : > { %s1284_s1 = sld [smem:[#allocation21_spill]]  ;;  %s226_s29 = scalar_lea.vmem [#allocation3], %s656_s10 }
  0x29   : > { %s238_s28 = sshll.u32 %s226_s29, 4  ;;  %p1144_p6 = pnand %p700_p4, %p1093_p5  ;;  %s239_s28 = int_to_ptr.vmem [resolvable:$true] %s238_s28 }
  0x2a   : > { %p664_p7 = scmp.ge.s32.totalorder %s991_s25, 1  ;;  %p272_p8 = scmp.lt.s32.totalorder %s991_s25, 5 }
  0x2b   : > { %s223_s5 = scalar_lea.sflag [#allocation4], %s1135_s9  ;;  %s993_s23 = smov 128  }
  0x2c   : > { %s994_s18 = smov 8   ;;  %p273_p10 = pnand %p664_p7, %p272_p8 }
  0x2d   : > { %s261_s27 = scalar_lea.hbm %s1261_s3, %s679_s26  ;;  %s252_s7 = scalar_lea.vmem [#allocation6], %s656_s10 }
  0x2e   : > { %s235_s6 = scalar_lea.hbm %s1284_s1, %s679_s26  ;;  %s264_s1 = sshll.u32 %s252_s7, 4  ;;  %s265_s1 = int_to_ptr.vmem [resolvable:$true] %s264_s1 }
  0x2f   : > { %s236_s14 = sshll.u32 %s235_s6, 4  ;;  %s262_s6 = sshll.u32 %s261_s27, 4  ;;  %s237_s14 = int_to_ptr.hbm [resolvable:$true] %s236_s14  ;;  %s263_s6 = int_to_ptr.hbm [resolvable:$true] %s262_s6 }
  0x30   : > { %692 = dma.hbm_to_vmem [thread:$0]  (!%p1144_p6), %s237_s14, 256, %s239_s28, %s223_s5, %s993_s23, %s993_s23, %s994_s18  }
  0x31   : > { %s249_s20 = scalar_lea.sflag [#allocation7], %s1135_s9  ;;  %276 = sbr.rel (%p273_p10) target bundleno = 445 (0x1bd), region = 36 }
  0x32   : > { %695 = dma.hbm_to_vmem [thread:$0]  (!%p1144_p6), %s263_s6, 256, %s265_s1, %s249_s20, %s993_s23, %s993_s23, %s994_s18  }
  0x33   : > { %s278_s13 = sand.u32 (!%p273_p10), 1, %s967_s19  }
  0x34   : > { %s665_s17 = sshll.u32 (!%p273_p10), %s278_s13, 4  ;;  %s279_s8 = scalar_lea.sflag (!%p273_p10), [#allocation4], %s278_s13 }
  0x35   : > { %s1160_s28 = scalar_lea.vmem (!%p273_p10), [#allocation3], %s665_s17 }
  0x36   : > { %938 = dma.done.wait (%p1105_p9), %s279_s8, 256  }
  0x37   : > { %940 = vsyncadd (%p1105_p9), %s279_s8, 4294967040  ;;  %s289_s26 = scalar_lea.sflag [#allocation7], %s278_s13  ;;  %s1166_s10 = scalar_lea.vmem [#allocation6], %s665_s17 }
  0x38   : > { %942 = dma.done.wait (%p1105_p9), %s289_s26, 256  }
  0x39   : > { %944 = vsyncadd (%p1105_p9), %s289_s26, 4294967040  ;;  %s329_s1 = sand.u32 1, %s955_s16   ;;  %s668_s20 = sshll.u32 %s979_s22, 1 }
  0x3a   : > { %s1176_s23 = sshll.u32 %s329_s1, 3  ;;  %s1179_s24 = sadd.s32 %s975_s21, %s668_s20 }
  0x3b   : > { %p334_p5 = scmp.lt.s32.totalorder %s1179_s24, 2  ;;  %s331_s14 = scalar_lea.vmem [#allocation8], %s1176_s23 }
  0x3c   : > { %p671_p9 = scmp.ne.s32.totalorder %s975_s21, 0 }
  0x3d   : > { %s335_s17 = scalar_select %p334_p5, %s1179_s24, 2 }
  0x3f   : > { %s669_s13 = sshll.u32 %s335_s17, 1 }
  0x40   : > { %p337_p11 = scmp.lt.s32.totalorder %s669_s13, 5  ;;  %359 = sbr.rel (%p671_p9) target bundleno = 72 (0x48), region = 48 }
  0x42   : > { %s1310_s13 = smov (!%p337_p11, %s669_s13), 5 }
  0x43   : > { %s670_s11 = sshll.u32 %s1310_s13, 3 }
  0x44   : > { %s340_s9 = scalar_lea.vmem %s1258_s0, %s670_s11 }
  0x45   : > { %vm360_vm0 = vcmask 7168   ;;  %v995_v0 = vmov 0.0  }
  0x46   : > { %361 = vst.msk [vmem:[#allocation2] sm:$0xff] %vm360_vm0, %v995_v0 }
  0x47   : > { %362 = vst.msk [vmem:[#allocation2 + $0x8] sm:$0xff] %vm360_vm0, %v995_v0 }
  0x48 PF: > { %v365_v1 = vld [vmem:[%s1160_s28] sm:$0xff]  ;;  %v458_v8 = vld [vmem:[%s1166_s10 + $0x8] sm:$0xff]  ;;  %v473_v55 = vlaneseq  ;;  %s673_s5 = sshll.u32 %s1179_s24, 4  ;;  %vm487_vm14 = vcmask 7168   ;;  %p674_p12 = scmp.ne.s32.totalorder %s975_s21, 1 }
  0x49   : > { %v363_v2 = vld [vmem:[%s340_s9] sm:$0xff]  ;;  %v387_v3 = vmul.f32 %v365_v1, %v365_v1  ;;  %v366_v9 = vld [vmem:[%s1160_s28 + $0x8] sm:$0xff]  ;;  %v460_v12 = vand.u32 2147483647, %v458_v8  ;;  %s452_s27 = scalar_lea.vmem %s1260_s2, %s673_s5 }
  0x4a   : > { %v381_v4 = vmul.f32 %v363_v2, %v363_v2  ;;  %v375_v5 = vmul.f32 %v365_v1, %v363_v2  ;;  %v457_v6 = vld [vmem:[%s1166_s10] sm:$0xff]  ;;  %v364_v10 = vld [vmem:[%s340_s9 + $0x8] sm:$0xff]  ;;  %v388_v13 = vmul.f32 %v366_v9, %v366_v9  ;;  %v367_v18 = vsub.f32 %v363_v2, %v365_v1 }
  0x4b   : > { %v459_v7 = vand.u32 2147483647, %v457_v6  ;;  %389 = vadd.xlane.f32.xlu1 %v387_v3  ;;  %v382_v14 = vmul.f32 %v364_v10, %v364_v10  ;;  %v376_v16 = vmul.f32 %v366_v9, %v364_v10  ;;  %v462_v17 = vsub.f32 0.0, %v460_v12 }
  0x4c   : > { %383 = vadd.xlane.f32.xlu0 %v381_v4  ;;  %377 = vadd.xlane.f32.xlu2 %v375_v5  ;;  %v368_v19 = vsub.f32 %v364_v10, %v366_v9  ;;  %v369_v21 = vmul.f32 %v367_v18, %v367_v18  ;;  %v474_v63 = vshrl.u32 %v473_v55, 7  ;;  %v476_v3 = vstv %s673_s5  ;;  %v453_v9 = vld [vmem:[%s452_s27] sm:$0xff] }
  0x4d   : > { %v461_v11 = vsub.f32 0.0, %v459_v7  ;;  %v465_v20 = vmul.f32 1.442695, %v462_v17  ;;  %v483_v17 = vld [vmem:[#allocation2] sm:$0xff] }
  0x4e   : > { %v370_v22 = vmul.f32 %v368_v19, %v368_v19  ;;  %v477_v10 = vadd.s32 %v476_v3, %v474_v63 }
  0x4f   : > { %v463_v15 = vmul.f32 1.442695, %v461_v11 }
  0x50   : > { %vm479_vm13 = vcmp.lt.s32.totalorder %v477_v10, 48 }
  0x51   : > { %793 = vpow2.f32 %v463_v15 }
  0x52   : > { %795 = vpow2.f32 %v465_v20 }
  0x53   : > { %391 = vadd.xlane.f32.xlu1 %v388_v13 }
  0x54   : > { %385 = vadd.xlane.f32.xlu0 %v382_v14  ;;  %379 = vadd.xlane.f32.xlu2 %v376_v16  ;;  %v475_v16 = vadd.s32 8, %v474_v63 }
  0x57   : > { %v794_v23 = vpop.eup %793 }
  0x58   : > { %v796_v24 = vpop.eup %795 }
  0x5b   : > { %373 = vadd.xlane.f32.xlu1 %v370_v22 }
  0x5c   : > { %371 = vadd.xlane.f32.xlu0 %v369_v21  ;;  %467 = vadd.xlane.f32.xlu2 %v794_v23 }
  0x64   : > { %469 = vadd.xlane.f32.xlu0 %v796_v24  ;;  %v454_v24 = vld [vmem:[%s452_s27 + $0x8] sm:$0xff] }
  0xbe   : > { %v390_v25 = vpop.xlane.xlu1 %389 }
  0xbf   : > { %v384_v26 = vpop.xlane.xlu0 %383  ;;  %v415_v27 = vmax.f32 %v390_v25, 1e-16  ;;  %v378_v39 = vpop.xlane.xlu2 %377  ;;  %v478_v25 = vadd.s32 %v476_v3, %v475_v16 }
  0xc0   : > { %v393_v28 = vmax.f32 %v384_v26, 1e-16 }
  0xc1   : > { %797 = vrsqrt.f32 %v415_v27  ;;  %vm423_vm5 = vweird.f32 %v415_v27  ;;  %vm480_vm15 = vcmp.lt.s32.totalorder %v478_v25, 48 }
  0xc2   : > { %799 = vrsqrt.f32 %v393_v28  ;;  %vm401_vm2 = vweird.f32 %v393_v28 }
  0xc6   : > { %v392_v29 = vpop.xlane.xlu1 %391 }
  0xc7   : > { %v386_v30 = vpop.xlane.xlu0 %385  ;;  %v798_v31 = vpop.eup %797  ;;  %v416_v32 = vmax.f32 %v392_v29, 1e-16  ;;  %v484_v29 = vld [vmem:[#allocation2 + $0x8] sm:$0xff] }
  0xc8   : > { %v394_v33 = vmax.f32 %v386_v30, 1e-16  ;;  %v800_v34 = vpop.eup %799  ;;  %v418_v35 = vmul.f32 %v798_v31, %v415_v27  ;;  %vm424_vm3 = vweird.f32 %v798_v31  ;;  %v380_v58 = vpop.xlane.xlu2 %379 }
  0xc9   : > { %v396_v36 = vmul.f32 %v800_v34, %v393_v28  ;;  %801 = vrsqrt.f32 %v416_v32  ;;  %vm402_vm1 = vweird.f32 %v800_v34  ;;  %vm425_vm6 = vmor %vm423_vm5, %vm424_vm3  ;;  %vm433_vm11 = vweird.f32 %v416_v32 }
  0xca   : > { %v419_v37 = vmul.f32 %v798_v31, %v418_v35  ;;  %803 = vrsqrt.f32 %v394_v33  ;;  %vm403_vm4 = vmor %vm401_vm2, %vm402_vm1  ;;  %vm411_vm8 = vweird.f32 %v394_v33 }
  0xcb   : > { %v397_v38 = vmul.f32 %v800_v34, %v396_v36 }
  0xcc   : > { %v420_v40 = vmul.f32 0.5, %v419_v37 }
  0xcd   : > { %v398_v41 = vmul.f32 0.5, %v397_v38 }
  0xce   : > { %v421_v42 = vsub.f32 1.5, %v420_v40  ;;  %v374_v20 = vpop.xlane.xlu1 %373 }
  0xcf   : > { %v802_v43 = vpop.eup %801  ;;  %v399_v44 = vsub.f32 1.5, %v398_v41  ;;  %v372_v5 = vpop.xlane.xlu0 %371 }
  0xd0   : > { %v804_v45 = vpop.eup %803  ;;  %v428_v46 = vmul.f32 %v802_v43, %v416_v32  ;;  %v422_v49 = vmul.f32 %v798_v31, %v421_v42  ;;  %vm434_vm9 = vweird.f32 %v802_v43  ;;  %v468_v13 = vpop.xlane.xlu2 %467 }
  0xd1   : > { %v406_v47 = vmul.f32 %v804_v45, %v394_v33  ;;  %v400_v48 = vmul.f32 %v800_v34, %v399_v44  ;;  %vm412_vm7 = vweird.f32 %v804_v45  ;;  %vm435_vm12 = vmor %vm433_vm11, %vm434_vm9 }
  0xd2   : > { %v429_v50 = vmul.f32 %v802_v43, %v428_v46  ;;  %v426_v57 = vsel %vm425_vm6, %v798_v31, %v422_v49  ;;  %vm413_vm10 = vmor %vm411_vm8, %vm412_vm7 }
  0xd3   : > { %v407_v51 = vmul.f32 %v804_v45, %v406_v47  ;;  %v404_v52 = vsel %vm403_vm4, %v800_v34, %v400_v48 }
  0xd4   : > { %v430_v53 = vmul.f32 0.5, %v429_v50  ;;  %v437_v54 = vmul.f32 %v404_v52, %v378_v39 }
  0xd5   : > { %v408_v56 = vmul.f32 0.5, %v407_v51 }
  0xd6   : > { %v431_v59 = vsub.f32 1.5, %v430_v53  ;;  %v439_v60 = vmul.f32 %v437_v54, %v426_v57 }
  0xd7   : > { %v409_v61 = vsub.f32 1.5, %v408_v56  ;;  %v470_v27 = vpop.xlane.xlu0 %469 }
  0xd8   : > { %v441_v62 = vsub.f32 1.0, %v439_v60  ;;  %v432_v1 = vmul.f32 %v802_v43, %v431_v59 }
  0xd9   : > { %v410_v0 = vmul.f32 %v804_v45, %v409_v61 }
  0xda   : > { %v443_v2 = vmul.f32 0.5, %v441_v62  ;;  %v436_v8 = vsel %vm435_vm12, %v802_v43, %v432_v1 }
  0xdb   : > { %v414_v4 = vsel %vm413_vm10, %v804_v45, %v410_v0 }
  0xdc   : > { %v438_v6 = vmul.f32 %v414_v4, %v380_v58  ;;  %v445_v7 = vadd.f32 1.0, %v443_v2 }
  0xde   : > { %v440_v11 = vmul.f32 %v438_v6, %v436_v8  ;;  %v447_v12 = vmul.f32 %v445_v7, %v372_v5 }
  0xe0   : > { %v442_v14 = vsub.f32 1.0, %v440_v11  ;;  %v455_v15 = vmul.f32 %v453_v9, %v447_v12 }
  0xe2   : > { %v471_v18 = vmul.f32 %v468_v13, %v455_v15  ;;  %v444_v19 = vmul.f32 0.5, %v442_v14 }
  0xe4   : > { %v481_v21 = vsel %vm479_vm13, %v471_v18, 0.0  ;;  %v446_v22 = vadd.f32 1.0, %v444_v19 }
  0xe5   : > { %v485_v23 = vadd.f32 %v483_v17, %v481_v21 }
  0xe6   : > { %v448_v26 = vmul.f32 %v446_v22, %v374_v20 }
  0xe7   : > { %488 = vst.msk [vmem:[#allocation2] sm:$0xff] %vm487_vm14, %v485_v23 }
  0xe8   : > { %v456_v28 = vmul.f32 %v454_v24, %v448_v26 }
  0xea   : > { %v472_v30 = vmul.f32 %v470_v27, %v456_v28 }
  0xeb   : > { %493 = sbr.rel (%p674_p12) target bundleno = 430 (0x1ae), region = 52 }
  0xec   : > { %v482_v31 = vsel %vm480_vm15, %v472_v30, 0.0 }
  0xed   : > { %v486_v32 = vadd.f32 %v484_v29, %v482_v31 }
  0xef   : > { %489 = vst.msk [vmem:[#allocation2 + $0x8] sm:$0xff] %vm487_vm14, %v486_v32 }
  0xf0   : > { %v494_v33 = vld [vmem:[#allocation2] sm:$0xff] }
  0xf1   : > { %v496_v35 = vsel %vm487_vm14, %v494_v33, 0.0 }
  0xf6   : > { %v495_v34 = vld [vmem:[#allocation2 + $0x8] sm:$0xff] }
  0xf7   : > { %v497_v36 = vsel %vm487_vm14, %v495_v34, 0.0 }
  0xf8   : > { %v498_v37 = vadd.f32 %v497_v36, %v496_v35 }
  0xfa   : > { %499 = vadd.xlane.f32.xlu0 %v498_v37 }
 0x16d   : > { %v500_v38 = vpop.xlane.xlu0 %499 }
 0x16e   : > { %v501_v39 = vrot.slane %v500_v38, 4 }
 0x170   : > { %v502_v40 = vadd.f32 %v501_v39, %v500_v38 }
 0x172   : > { %v503_v41 = vrot.slane %v502_v40, 2 }
 0x174   : > { %v504_v42 = vadd.f32 %v503_v41, %v502_v40 }
 0x176   : > { %v505_v43 = vrot.slane %v504_v42, 1 }
 0x178   : > { %v506_v44 = vadd.f32 %v505_v43, %v504_v42 }
 0x17a   : > { %681 = vpush %v506_v44 }
 0x1ab   : > { %s682_s6 = spop %681 }
 0x1ac   : > { %v508_v45 = vstv %s682_s6 }
 0x1ad   : > { %509 = vst [vmem:[%s331_s14] sm:$0xff] %v508_v45 }
 0x1ae PF: > { %s676_s21 = sshll.u32 %s979_s22, 3  ;;  %s523_s10 = sshll.u32 %s331_s14, 4  ;;  %s524_s10 = int_to_ptr.vmem [resolvable:$true] %s523_s10 }
 0x1af   : > { %s521_s26 = scalar_lea.hbm %s1262_s4, %s676_s21  ;;  %s511_s24 = scalar_lea.sflag [#allocation5], %s329_s1 }
 0x1b0   : > { %s525_s20 = sshll.u32 %s521_s26, 4  ;;  %s885_s18 = scalar_lea.hbm %s1262_s4, 16  ;;  %s526_s20 = int_to_ptr.hbm [resolvable:$true] %s525_s20 }
 0x1b1   : > { %s879_s17 = sshra.s32 %s526_s20, 4  ;;  %s880_s17 = int_to_ptr.hbm [resolvable:$true] %s879_s17 }
 0x1b2   : > { %s881_s13 = scalar_lea.hbm %s880_s17, 8  ;;  %p886_p4 = scmp.lt.s32.totalorder %s880_s17, %s1262_s4 }
 0x1b3   : > { %p882_p13 = scmp.ne.s32.totalorder %s880_s17, %s881_s13  ;;  %p887_p6 = scmp.lt.s32.totalorder %s885_s18, %s881_s13 }
 0x1b5   : > { %p883_p0 = pnand %p882_p13, %p1125_p2  ;;  %p888_p7 = por %p887_p6, %p886_p4 }
 0x1b7   : > { %p884_p1 = pneg %p883_p0 }
 0x1b9   : > { %p889_p8 = pnand %p888_p7, %p884_p1 }
 0x1bb   : > { %892 = shalt.err (!%p889_p8)
}
 0x1bc   : > { %687 = dma.vmem_to_hbm [thread:$0]  (%p1125_p2), %s524_s10, 128, %s526_s20, %s511_s24  }
 0x1bd PF: > { %p701_p10 = scmp.ge.s32.totalorder %s991_s25, 2  ;;  %s537_s23 = sand.u32 1, %s951_s15  }
 0x1be   : > { %s538_s14 = scalar_lea.sflag [#allocation5], %s537_s23 }
 0x1bf   : > { %p697_p5 = pnand %p701_p10, %p1129_p3 }
 0x1c1   : > { %p698_p11 = pneg %p697_p5 }
 0x1c3   : > { %946 = dma.done.wait (%p698_p11), %s538_s14, 128  }
 0x1c4   : > { %948 = vsyncadd (%p698_p11), %s538_s14, 4294967168  ;;  %s23_s25 = sadd.s32 1, %s991_s25   ;;  %s1287_s5 = sld [smem:[#allocation12_spill]] }
 0x1c5   : > { %p20_p9 = scmp.ge.s32.totalorder %s23_s25, 6   ;;  %s1288_s17 = sld [smem:[#allocation18_spill]] }
 0x1c6   : > { %s1289_s30 = sld [smem:[#allocation13_spill]]  ;;  %s1295_s15 = smov %s955_s16 }
 0x1c7   : > { %s1290_s20 = sld [smem:[#allocation19_spill]]  ;;  %s1297_s18 = smov %s967_s19 }
 0x1c8   : > { %s1291_s21 = sld [smem:[#allocation14_spill]]  ;;  %22 = sbr.rel (!%p20_p9) target bundleno = 13 (0xd), region = 106 }
 0x1c9   : > { %s1292_s22 = sld [smem:[#allocation15_spill]] }
 0x1ca   : > { %s1293_s23 = sld [smem:[#allocation16_spill]]  ;;  %s1296_s16 = smov %s1287_s5 }
 0x1cb   : > { %s1294_s24 = sld [smem:[#allocation17_spill]] }
 0x1cc   : > { %s1298_s19 = smov %s1289_s30 }
 0x1cd   :  { %544 = vsyncpa [#allocation4], 1 }
 0x1ce   :  { %546 = vsyncpa [#allocation4 + $0x1], 1 }
 0x1cf   :  { %547 = vsyncpa [#allocation7], 1 }
 0x1d0   :  { %549 = vsyncpa [#allocation7 + $0x1], 1 }
 0x1d1   :  { %550 = vsyncpa [#allocation5], 1 }
 0x1d2   :  { %552 = vsyncpa [#allocation5 + $0x1], 1 }

</bundles_post_ra>
